<compile_context>
chip_gen: v5e
topology: v5e:2x2
jax: 0.10.0
libtpu: 0.0.40
codegen_flags: <defaults>
</compile_context>

<pallas_src>
import jax
import jax.numpy as jnp
from jax import lax
from jax.experimental import pallas as pl
from jax.experimental.pallas import tpu as pltpu


def torch_rnn_kernel(ids_ref, emb_ref, wih_t_ref, whh_t_ref, out_ref):
    B, L = ids_ref.shape
    V, D = emb_ref.shape
    H = out_ref.shape[1]

    # ---- Embedding lookup fused with AvgPool1d(L) ----
    # counts[b, v] = (#occurrences of token v in row b) / L ; pooled = counts @ E.
    # NOTE: for a real vocabulary (V*D f32 > VMEM) this should become an HBM
    # gather (emb in memory_space=pl.ANY + make_async_copy); fine at toy size.
    ids = ids_ref[...]                                            # (B, L) int32
    v_iota = lax.broadcasted_iota(jnp.int32, (B, L, V), 2)        # (B, L, V)
    onehot = (ids[:, :, None] == v_iota).astype(jnp.float32)      # (B, L, V)
    counts = jnp.sum(onehot, axis=1) * (1.0 / L)                  # (B, V)
    pooled = jnp.dot(counts, emb_ref[...],
                     preferred_element_type=jnp.float32)          # (B, D)

    # ---- Hoisted input projection: one (B,D)x(D,H) matmul before the loop ----
    x_proj = jnp.dot(pooled, wih_t_ref[...],
                     preferred_element_type=jnp.float32)          # (B, H)
    whh_t = whh_t_ref[...]                                        # (H, H)

    # ---- nn.RNN (bias=False, tanh) over the "batch" dim; h stays in vregs ----
    h = jnp.zeros((1, H), jnp.float32)
    rows = []
    for t in range(B):  # B is small and static -> fully unrolled
        h = jnp.tanh(x_proj[t:t + 1, :]
                     + jnp.dot(h, whh_t, preferred_element_type=jnp.float32))
        rows.append(h)
    h_all = jnp.concatenate(rows, axis=0)                         # (B, H)

    # Single vectorized sigmoid (one EUP batch) + one full-block store.
    out_ref[...] = jax.nn.sigmoid(h_all).astype(out_ref.dtype)


def torch_rnn_forward(ids, emb_table, w_ih, w_hh):
    """ids: (B, L) int32; emb_table: (V, D); w_ih: (H, D); w_hh: (H, H)."""
    B, L = ids.shape
    V, D = emb_table.shape
    H = w_ih.shape[0]
    wih_t = jnp.asarray(w_ih).T          # (D, H)
    whh_t = jnp.asarray(w_hh).T          # (H, H)
    return pl.pallas_call(
        torch_rnn_kernel,
        out_shape=jax.ShapeDtypeStruct((B, H), jnp.float32),
        in_specs=[pl.BlockSpec(memory_space=pltpu.MemorySpace.VMEM)] * 4,
        out_specs=pl.BlockSpec(memory_space=pltpu.MemorySpace.VMEM),
    )(jnp.asarray(ids, jnp.int32), jnp.asarray(emb_table, jnp.float32),
      wih_t.astype(jnp.float32), whh_t.astype(jnp.float32))


def _reference(ids, emb_table, w_ih, w_hh):
    # Pure-JAX mirror of the PyTorch forward (for sanity check only).
    emb = emb_table[ids]                     # (B, L, D)
    pooled = emb.mean(axis=1)                # (B, D)  == AvgPool1d(L) + squeeze
    B = pooled.shape[0]
    H = w_ih.shape[0]
    h = jnp.zeros((H,), jnp.float32)
    outs = []
    for t in range(B):                       # unbatched RNN over "batch" dim
        h = jnp.tanh(pooled[t] @ w_ih.T + h @ w_hh.T)
        outs.append(h)
    return jax.nn.sigmoid(jnp.stack(outs))


if __name__ == "__main__":
    # Small shapes consistent with the module.
    vocab_size = 30                       # len(vocab)
    V = vocab_size + 2                    # embedding rows (len(vocab) + 2)
    D = 32                                # input_size
    H = 32                                # hidden_size
    L = 8                                 # sentence_length
    B = 8                                 # batch

    key = jax.random.PRNGKey(0)
    k_emb, k_ih, k_hh, k_ids = jax.random.split(key, 4)

    # Deterministic parameter init (PyTorch-style shapes).
    emb_table = jax.random.normal(k_emb, (V, D), jnp.float32)
    emb_table = emb_table.at[0].set(0.0)          # padding_idx=0 row is zero
    bound = 1.0 / jnp.sqrt(H)
    w_ih = jax.random.uniform(k_ih, (H, D), jnp.float32, -bound, bound)
    w_hh = jax.random.uniform(k_hh, (H, H), jnp.float32, -bound, bound)

    ids = jax.random.randint(k_ids, (B, L), 1, V, dtype=jnp.int32)

    y_pred = torch_rnn_forward(ids, emb_table, w_ih, w_hh)
    y_pred = jax.block_until_ready(y_pred)

    y_ref = _reference(ids, emb_table, w_ih, w_hh)
    assert y_pred.shape == (B, H)
    assert jnp.allclose(y_pred, y_ref, atol=1e-5, rtol=1e-5)

    print("KERNEL_OK")
</pallas_src>

<mosaic_0001>
module attributes {stable_mosaic.version = 11 : i64} {
  func.func @torch_rnn_kernel(%arg0: memref<8x8xi32, #tpu.memory_space<vmem>>, %arg1: memref<32x32xf32, #tpu.memory_space<vmem>>, %arg2: memref<32x32xf32, #tpu.memory_space<vmem>>, %arg3: memref<32x32xf32, #tpu.memory_space<vmem>>, %arg4: memref<8x32xf32, #tpu.memory_space<vmem>>) attributes {dimension_semantics = [], scalar_prefetch = 0 : i64, scratch_operands = 0 : i64, tpu.core_type = #tpu.core_type<tc>} {
    %c0 = arith.constant 0 : index
    %c0_0 = arith.constant 0 : index
    %0 = vector.load %arg0[%c0, %c0_0] : memref<8x8xi32, #tpu.memory_space<vmem>>, vector<8x8xi32>
    %1 = tpu.iota {dimensions = array<i32: 2>} : vector<8x8x32xi32>
    %2 = vector.shape_cast %0 : vector<8x8xi32> to vector<8x8x1xi32>
    %3 = vector.broadcast %2 : vector<8x8x1xi32> to vector<8x8x32xi32>
    %4 = arith.cmpi eq, %3, %1 : vector<8x8x32xi32>
    %5 = arith.extui %4 : vector<8x8x32xi1> to vector<8x8x32xi32>
    %6 = arith.sitofp %5 : vector<8x8x32xi32> to vector<8x8x32xf32>
    %cst = arith.constant dense<0.000000e+00> : vector<8x32xf32>
    %7 = vector.multi_reduction <add>, %6, %cst [1] : vector<8x8x32xf32> to vector<8x32xf32>
    %cst_1 = arith.constant 1.250000e-01 : f32
    %8 = vector.broadcast %cst_1 : f32 to vector<8x32xf32>
    %9 = arith.mulf %7, %8 : vector<8x32xf32>
    %c0_2 = arith.constant 0 : index
    %c0_3 = arith.constant 0 : index
    %10 = vector.load %arg1[%c0_2, %c0_3] : memref<32x32xf32, #tpu.memory_space<vmem>>, vector<32x32xf32>
    %cst_4 = arith.constant dense<0.000000e+00> : vector<8x32xf32>
    %11 = tpu.matmul %9, %10, %cst_4 {dimension_numbers = #tpu.dot_dimension_numbers<[1], [0], [0], [1], [0, 0, 1, 1], [], []>} : vector<8x32xf32>, vector<32x32xf32>, vector<8x32xf32> -> vector<8x32xf32>
    %c0_5 = arith.constant 0 : index
    %c0_6 = arith.constant 0 : index
    %12 = vector.load %arg2[%c0_5, %c0_6] : memref<32x32xf32, #tpu.memory_space<vmem>>, vector<32x32xf32>
    %cst_7 = arith.constant dense<0.000000e+00> : vector<8x32xf32>
    %13 = tpu.matmul %11, %12, %cst_7 {dimension_numbers = #tpu.dot_dimension_numbers<[1], [0], [0], [1], [0, 0, 1, 1], [], []>} : vector<8x32xf32>, vector<32x32xf32>, vector<8x32xf32> -> vector<8x32xf32>
    %c0_8 = arith.constant 0 : index
    %c0_9 = arith.constant 0 : index
    %14 = vector.load %arg3[%c0_8, %c0_9] : memref<32x32xf32, #tpu.memory_space<vmem>>, vector<32x32xf32>
    %cst_10 = arith.constant 0.000000e+00 : f32
    %15 = vector.broadcast %cst_10 : f32 to vector<1x32xf32>
    %16 = vector.extract_strided_slice %13 {offsets = [0, 0], sizes = [1, 32], strides = [1, 1]} : vector<8x32xf32> to vector<1x32xf32>
    %cst_11 = arith.constant dense<0.000000e+00> : vector<1x32xf32>
    %17 = tpu.matmul %15, %14, %cst_11 {dimension_numbers = #tpu.dot_dimension_numbers<[1], [0], [0], [1], [0, 0, 1, 1], [], []>} : vector<1x32xf32>, vector<32x32xf32>, vector<1x32xf32> -> vector<1x32xf32>
    %18 = arith.addf %16, %17 : vector<1x32xf32>
    %19 = math.tanh %18 : vector<1x32xf32>
    %20 = vector.extract_strided_slice %13 {offsets = [1, 0], sizes = [1, 32], strides = [1, 1]} : vector<8x32xf32> to vector<1x32xf32>
    %cst_12 = arith.constant dense<0.000000e+00> : vector<1x32xf32>
    %21 = tpu.matmul %19, %14, %cst_12 {dimension_numbers = #tpu.dot_dimension_numbers<[1], [0], [0], [1], [0, 0, 1, 1], [], []>} : vector<1x32xf32>, vector<32x32xf32>, vector<1x32xf32> -> vector<1x32xf32>
    %22 = arith.addf %20, %21 : vector<1x32xf32>
    %23 = math.tanh %22 : vector<1x32xf32>
    %24 = vector.extract_strided_slice %13 {offsets = [2, 0], sizes = [1, 32], strides = [1, 1]} : vector<8x32xf32> to vector<1x32xf32>
    %cst_13 = arith.constant dense<0.000000e+00> : vector<1x32xf32>
    %25 = tpu.matmul %23, %14, %cst_13 {dimension_numbers = #tpu.dot_dimension_numbers<[1], [0], [0], [1], [0, 0, 1, 1], [], []>} : vector<1x32xf32>, vector<32x32xf32>, vector<1x32xf32> -> vector<1x32xf32>
    %26 = arith.addf %24, %25 : vector<1x32xf32>
    %27 = math.tanh %26 : vector<1x32xf32>
    %28 = vector.extract_strided_slice %13 {offsets = [3, 0], sizes = [1, 32], strides = [1, 1]} : vector<8x32xf32> to vector<1x32xf32>
    %cst_14 = arith.constant dense<0.000000e+00> : vector<1x32xf32>
    %29 = tpu.matmul %27, %14, %cst_14 {dimension_numbers = #tpu.dot_dimension_numbers<[1], [0], [0], [1], [0, 0, 1, 1], [], []>} : vector<1x32xf32>, vector<32x32xf32>, vector<1x32xf32> -> vector<1x32xf32>
    %30 = arith.addf %28, %29 : vector<1x32xf32>
    %31 = math.tanh %30 : vector<1x32xf32>
    %32 = vector.extract_strided_slice %13 {offsets = [4, 0], sizes = [1, 32], strides = [1, 1]} : vector<8x32xf32> to vector<1x32xf32>
    %cst_15 = arith.constant dense<0.000000e+00> : vector<1x32xf32>
    %33 = tpu.matmul %31, %14, %cst_15 {dimension_numbers = #tpu.dot_dimension_numbers<[1], [0], [0], [1], [0, 0, 1, 1], [], []>} : vector<1x32xf32>, vector<32x32xf32>, vector<1x32xf32> -> vector<1x32xf32>
    %34 = arith.addf %32, %33 : vector<1x32xf32>
    %35 = math.tanh %34 : vector<1x32xf32>
    %36 = vector.extract_strided_slice %13 {offsets = [5, 0], sizes = [1, 32], strides = [1, 1]} : vector<8x32xf32> to vector<1x32xf32>
    %cst_16 = arith.constant dense<0.000000e+00> : vector<1x32xf32>
    %37 = tpu.matmul %35, %14, %cst_16 {dimension_numbers = #tpu.dot_dimension_numbers<[1], [0], [0], [1], [0, 0, 1, 1], [], []>} : vector<1x32xf32>, vector<32x32xf32>, vector<1x32xf32> -> vector<1x32xf32>
    %38 = arith.addf %36, %37 : vector<1x32xf32>
    %39 = math.tanh %38 : vector<1x32xf32>
    %40 = vector.extract_strided_slice %13 {offsets = [6, 0], sizes = [1, 32], strides = [1, 1]} : vector<8x32xf32> to vector<1x32xf32>
    %cst_17 = arith.constant dense<0.000000e+00> : vector<1x32xf32>
    %41 = tpu.matmul %39, %14, %cst_17 {dimension_numbers = #tpu.dot_dimension_numbers<[1], [0], [0], [1], [0, 0, 1, 1], [], []>} : vector<1x32xf32>, vector<32x32xf32>, vector<1x32xf32> -> vector<1x32xf32>
    %42 = arith.addf %40, %41 : vector<1x32xf32>
    %43 = math.tanh %42 : vector<1x32xf32>
    %44 = vector.extract_strided_slice %13 {offsets = [7, 0], sizes = [1, 32], strides = [1, 1]} : vector<8x32xf32> to vector<1x32xf32>
    %cst_18 = arith.constant dense<0.000000e+00> : vector<1x32xf32>
    %45 = tpu.matmul %43, %14, %cst_18 {dimension_numbers = #tpu.dot_dimension_numbers<[1], [0], [0], [1], [0, 0, 1, 1], [], []>} : vector<1x32xf32>, vector<32x32xf32>, vector<1x32xf32> -> vector<1x32xf32>
    %46 = arith.addf %44, %45 : vector<1x32xf32>
    %47 = math.tanh %46 : vector<1x32xf32>
    %48 = tpu.concatenate %19, %23, %27, %31, %35, %39, %43, %47 in 0 : vector<1x32xf32>, vector<1x32xf32>, vector<1x32xf32>, vector<1x32xf32>, vector<1x32xf32>, vector<1x32xf32>, vector<1x32xf32>, vector<1x32xf32> -> vector<8x32xf32>
    %49 = arith.negf %48 : vector<8x32xf32>
    %50 = math.exp %49 : vector<8x32xf32>
    %cst_19 = arith.constant 1.000000e+00 : f32
    %51 = vector.broadcast %cst_19 : f32 to vector<8x32xf32>
    %52 = arith.addf %51, %50 : vector<8x32xf32>
    %53 = arith.divf %51, %52 : vector<8x32xf32>
    %c0_20 = arith.constant 0 : index
    %c0_21 = arith.constant 0 : index
    %54 = vector.load %arg4[%c0_20, %c0_21] : memref<8x32xf32, #tpu.memory_space<vmem>>, vector<8x32xf32>
    tpu.vector_store %arg4[%c0_20, %c0_21], %53 {strides = array<i32>} : memref<8x32xf32, #tpu.memory_space<vmem>>, vector<8x32xf32>,
    return
  }
}

</mosaic_0001>

<bundles_post_ra>
// kernel: tpu_custom_call.1
= control target key start
LH: loop header
LB: loop body
LE: loop exit
PB: predicated region body
PF: predicated region fallthrough
CT: control target
= control target key end

     0   :  { %9 = vsyncpa [#allocation3], 0  ;;  %s888_s0 = inlined_call_operand.hbm [shape: s32[8,8], index: 0, kind: input, shape index: {}]   ;;  %s889_s1 = inlined_call_operand.hbm [shape: f32[32,32], index: 1, kind: input, shape index: {}]   ;;  %s890_s2 = inlined_call_operand.hbm [shape: f32[32,32], index: 2, kind: input, shape index: {}]   ;;  %s891_s3 = inlined_call_operand.hbm [shape: f32[32,32], index: 3, kind: input, shape index: {}]   ;;  %s892_s4 = inlined_call_operand.hbm [shape: f32[8,32], index: 4, kind: output, shape index: {}]  }
   0x1   :  { %10 = vsyncpa [#allocation6], 0 }
   0x2   :  { %11 = vsyncpa [#allocation9], 0  ;;  %s28_s17 = sshll.u32 %s889_s1, 4  ;;  %s29_s17 = int_to_ptr.hbm [resolvable:$true] %s28_s17 }
   0x3   :  { %12 = vsyncpa [#allocation4], 0  ;;  %s763_s18 = smov [#allocation5]   ;;  %s18_s22 = sshll.u32 %s888_s0, 4  ;;  %s19_s22 = int_to_ptr.hbm [resolvable:$true] %s18_s22 }
   0x4   :  { %s30_s19 = sshll.u32 %s763_s18, 4  ;;  %s764_s23 = smov 128   ;;  %s31_s19 = int_to_ptr.vmem [resolvable:$true] %s30_s19 }
   0x5   :  { %s765_s24 = smov 8   ;;  %s766_s25 = smov [#allocation2]  }
   0x6   :  { %36 = dma.hbm_to_vmem [thread:$0]  %s29_s17, 512, %s31_s19, [#allocation6], %s764_s23, %s764_s23, %s765_s24  }
   0x7   :  { %s20_s26 = sshll.u32 %s766_s25, 4  ;;  %s41_s29 = sshll.u32 %s890_s2, 4  ;;  %s21_s26 = int_to_ptr.vmem [resolvable:$true] %s20_s26  ;;  %s42_s29 = int_to_ptr.hbm [resolvable:$true] %s41_s29 }
   0x8   :  { %23 = dma.hbm_to_vmem [thread:$0]  %s19_s22, 128, %s21_s26, [#allocation3]  }
   0x9   :  { %s54_s5 = sshll.u32 %s891_s3, 4  ;;  %s767_s6 = smov [#allocation7]   ;;  %s55_s5 = int_to_ptr.hbm [resolvable:$true] %s54_s5 }
   0xa   :  { %s43_s7 = sshll.u32 %s767_s6, 4  ;;  %s768_s0 = smov [#allocation8]   ;;  %s44_s7 = int_to_ptr.vmem [resolvable:$true] %s43_s7 }
   0xb   :  { %49 = dma.hbm_to_vmem [thread:$0]  %s42_s29, 512, %s44_s7, [#allocation6], %s764_s23, %s764_s23, %s765_s24  }
   0xc   :  { %s56_s8 = sshll.u32 %s768_s0, 4  ;;  %s57_s8 = int_to_ptr.vmem [resolvable:$true] %s56_s8 }
   0xd   :  { %62 = dma.hbm_to_vmem [thread:$0]  %s55_s5, 512, %s57_s8, [#allocation9], %s764_s23, %s764_s23, %s765_s24  }
   0xe   :  { %755 = dma.done.wait [#allocation3], 128  }
   0xf   :  { %756 = vsyncadd [#allocation3], 4294967168 }
  0x10   :  { %757 = dma.done.wait [#allocation6], 1024  }
  0x11   :  { %758 = vsyncadd [#allocation6], 4294966272 }
  0x12   :  { %759 = dma.done.wait [#allocation9], 512  }
  0x13   :  { %760 = vsyncadd [#allocation9], 4294966784  ;;  %v80_v0 = vlaneseq  ;;  %v79_v2 = vld [vmem:[#allocation2] sm:$0xff]  ;;  %vm162_vm1 = vcmask 261120   ;;  %v769_v13 = vmov 0.0   ;;  %v229_v18 = vld [vmem:[#allocation5 + $0x10] sm:$0xff] }
  0x14   :  { %v96_v3 = vperm.slane %v79_v2, 2  ;;  %v82_v4 = vperm.slane %v79_v2, 0  ;;  %v110_v5 = vperm.slane %v79_v2, 4  ;;  %v103_v6 = vperm.slane %v79_v2, 3  ;;  %v230_v16 = vld [vmem:[#allocation5 + $0x18] sm:$0xff]  ;;  %v228_v21 = vld [vmem:[#allocation5 + $0x8] sm:$0xff] }
  0x15   :  { %v84_v1 = vshrl.u32 %v80_v0, 7  ;;  %v89_v7 = vperm.slane %v79_v2, 1  ;;  %v117_v8 = vperm.slane %v79_v2, 5  ;;  %v131_v9 = vperm.slane %v79_v2, 7  ;;  %267 = vmatpush.msra.mxu0 %v230_v16  ;;  %v227_v22 = vld [vmem:[#allocation5] sm:$0xff]  ;;  %v822_v32 = vld [vmem:[#allocation8 + $0x18] sm:$0xff] }
  0x16   :  { %v124_v10 = vperm.slane %v79_v2, 6  ;;  %v808_v12 = vand.u32 127, %v80_v0  ;;  %v824_v33 = vld [vmem:[#allocation8 + $0x10] sm:$0xff]  ;;  %321 = vmatpush.msra.mxu2 %v822_v32  ;;  %v278_v35 = vld [vmem:[#allocation7 + $0x18] sm:$0xff]  ;;  %346 = vmatpush.msra.mxu3 %v822_v32  ;;  %v828_v39 = vld [vmem:[#allocation8 + $0x8] sm:$0xff]  ;;  %vm239_vm9 = vcmask 1041409  }
  0x17   :  { %613 = vset.pattern.permute.xlu1 %v84_v1  ;;  %612 = vset.pattern.permute.xlu0 %v84_v1  ;;  %v277_v36 = vld [vmem:[#allocation7 + $0x10] sm:$0xff]  ;;  %v276_v41 = vld [vmem:[#allocation7 + $0x8] sm:$0xff]  ;;  %v833_v45 = vld [vmem:[#allocation8] sm:$0xff]  ;;  %vm241_vm10 = vcmask 1042434   ;;  %vm243_vm11 = vcmask 1043459   ;;  %vm245_vm12 = vcmask 1044484  }
  0x18   :  { %614 = vset.pattern.permute.xlu2 %v84_v1  ;;  %268 = vmatpush.msra.mxu0 %v229_v18  ;;  %vm247_vm13 = vcmask 1045509   ;;  %vm249_vm14 = vcmask 1046534   ;;  %vm251_vm15 = vcmask 1047559   ;;  %s770_s2 = smov [#allocation10]   ;;  %s574_s11 = sshll.u32 %s892_s4, 4  ;;  %s575_s11 = int_to_ptr.hbm [resolvable:$true] %s574_s11 }
  0x19   :  { %294 = vmatpush.msra.mxu1 %v278_v35  ;;  %322 = vmatpush.msra.mxu2 %v824_v33  ;;  %s572_s3 = sshll.u32 %s770_s2, 4  ;;  %s573_s3 = int_to_ptr.vmem [resolvable:$true] %s572_s3 }
  0x1a   :  { %269 = vmatpush.msra.mxu0 %v228_v21  ;;  %347 = vmatpush.msra.mxu3 %v824_v33 }
  0x1b   :  { %295 = vmatpush.msra.mxu1 %v277_v36  ;;  %323 = vmatpush.msra.mxu2 %v828_v39 }
  0x1c   :  { %270 = vmatpush.msra.mxu0 %v227_v22  ;;  %348 = vmatpush.msra.mxu3 %v828_v39 }
  0x1d   :  { %296 = vmatpush.msra.mxu1 %v276_v41  ;;  %324 = vmatpush.msra.mxu2 %v833_v45 }
  0x1e   :  { %375 = vmatpush.msrb.mxu0 %v822_v32  ;;  %349 = vmatpush.msra.mxu3 %v833_v45 }
  0x1f   :  { %101 = vperm.xlu1 %613, %v96_v3   ;;  %87 = vperm.xlu0 %612, %v82_v4  }
  0x20   :  { %115 = vperm.xlu2 %614, %v110_v5   ;;  %376 = vmatpush.msrb.mxu0 %v824_v33 }
  0x21   :  { %325 = vmatmul.f32.vlgmr.msra.gmra.mxu2 %v769_v13  ;;  %462 = vmatpush.msrb.mxu3 %v822_v32 }
  0x22   :  { %377 = vmatpush.msrb.mxu0 %v828_v39  ;;  %433 = vmatpush.msrb.mxu2 %v822_v32 }
  0x23   :  { %463 = vmatpush.msrb.mxu3 %v824_v33 }
  0x24   :  { %378 = vmatpush.msrb.mxu0 %v833_v45  ;;  %434 = vmatpush.msrb.mxu2 %v824_v33 }
  0x25   :  { %464 = vmatpush.msrb.mxu3 %v828_v39 }
  0x26   :  { %435 = vmatpush.msrb.mxu2 %v828_v39 }
  0x27   :  { %108 = vperm.xlu1 %613, %v103_v6   ;;  %94 = vperm.xlu0 %612, %v89_v7  }
  0x28   :  { %122 = vperm.xlu2 %614, %v117_v8   ;;  %436 = vmatpush.msrb.mxu2 %v833_v45 }
  0x29   :  { %465 = vmatpush.msrb.mxu3 %v833_v45 }
  0x2f   :  { %136 = vperm.xlu1 %613, %v131_v9   ;;  %129 = vperm.xlu0 %612, %v124_v10  }
  0x7a   :  { %v116_v11 = vpop.permute.xlu2 %115 }
  0x7b   :  { %vm142_vm0 = vcmp.eq.s32.totalorder %v116_v11, %v808_v12 }
  0x7c   :  { %v590_v14 = vsel %vm142_vm0, 1.0, %v769_v13  ;;  %vm533_vm0 = vcmask 1040384  }
  0x7d   :  { %v191_v17 = vsel %vm162_vm1, %v590_v14, 0.0 }
  0x7e   :  { %v192_v23 = vrot.slane %v191_v17, 4 }
  0x80   :  { %v193_v34 = vadd.f32 %v192_v23, %v191_v17 }
  0x82   :  { %v123_v15 = vpop.permute.xlu2 %122  ;;  %v194_v46 = vrot.slane %v193_v34, 2 }
  0x83   :  { %vm143_vm2 = vcmp.eq.s32.totalorder %v123_v15, %v808_v12 }
  0x84   :  { %v591_v24 = vsel %vm143_vm2, 1.0, %v769_v13  ;;  %v195_v56 = vadd.f32 %v194_v46, %v193_v34  ;;  %vm535_vm2 = vcmask 1041408  }
  0x85   :  { %v198_v31 = vsel %vm162_vm1, %v591_v24, 0.0 }
  0x86   :  { %v199_v40 = vrot.slane %v198_v31, 4  ;;  %v196_v2 = vrot.slane %v195_v56, 1 }
  0x88   :  { %v200_v51 = vadd.f32 %v199_v40, %v198_v31 }
  0x8a   :  { %v201_v61 = vrot.slane %v200_v51, 2 }
  0x8c   :  { %v202_v9 = vadd.f32 %v201_v61, %v200_v51  ;;  %v275_v51 = vld [vmem:[#allocation7] sm:$0xff] }
  0x8d   :  { %297 = vmatpush.msra.mxu1 %v275_v51 }
  0x8e   :  { %v203_v22 = vrot.slane %v202_v9, 1 }
  0x8f   :  { %404 = vmatpush.msrb.mxu1 %v822_v32 }
  0x90   :  { %v204_v34 = vadd.f32 %v203_v22, %v202_v9 }
  0x91   :  { %v102_v19 = vpop.permute.xlu1 %101  ;;  %v88_v20 = vpop.permute.xlu0 %87  ;;  %405 = vmatpush.msrb.mxu1 %v824_v33 }
  0x92   :  { %vm140_vm3 = vcmp.eq.s32.totalorder %v102_v19, %v808_v12  ;;  %vm138_vm4 = vcmp.eq.s32.totalorder %v88_v20, %v808_v12 }
  0x93   :  { %v588_v25 = vsel %vm140_vm3, 1.0, %v769_v13  ;;  %v586_v26 = vsel %vm138_vm4, 1.0, %v769_v13  ;;  %406 = vmatpush.msrb.mxu1 %v828_v39  ;;  %vm537_vm3 = vcmask 1042432   ;;  %vm539_vm4 = vcmask 1043456  }
  0x94   :  { %v177_v27 = vsel %vm162_vm1, %v588_v25, 0.0  ;;  %v163_v28 = vsel %vm162_vm1, %v586_v26, 0.0 }
  0x95   :  { %v178_v29 = vrot.slane %v177_v27, 4  ;;  %v164_v30 = vrot.slane %v163_v28, 4  ;;  %407 = vmatpush.msrb.mxu1 %v833_v45 }
  0x97   :  { %v179_v37 = vadd.f32 %v178_v29, %v177_v27  ;;  %v165_v38 = vadd.f32 %v164_v30, %v163_v28 }
  0x99   :  { %v166_v42 = vrot.slane %v165_v38, 2  ;;  %v109_v43 = vpop.permute.xlu1 %108  ;;  %v95_v44 = vpop.permute.xlu0 %94  ;;  %v180_v47 = vrot.slane %v179_v37, 2 }
  0x9a   :  { %vm141_vm5 = vcmp.eq.s32.totalorder %v109_v43, %v808_v12  ;;  %vm139_vm6 = vcmp.eq.s32.totalorder %v95_v44, %v808_v12  ;;  %v224_v44 = vmul.f32 0.125, %v204_v34 }
  0x9b   :  { %v589_v48 = vsel %vm141_vm5, 1.0, %v769_v13  ;;  %v587_v49 = vsel %vm139_vm6, 1.0, %v769_v13  ;;  %v167_v50 = vadd.f32 %v166_v42, %v165_v38  ;;  %v181_v57 = vadd.f32 %v180_v47, %v179_v37 }
  0x9c   :  { %v184_v52 = vsel %vm162_vm1, %v589_v48, 0.0  ;;  %v170_v53 = vsel %vm162_vm1, %v587_v49, 0.0  ;;  %vm541_vm5 = vcmask 1044480   ;;  %vm543_vm6 = vcmask 1045504  }
  0x9d   :  { %v185_v54 = vrot.slane %v184_v52, 4  ;;  %v171_v55 = vrot.slane %v170_v53, 4  ;;  %v168_v60 = vrot.slane %v167_v50, 1  ;;  %v182_v3 = vrot.slane %v181_v57, 1 }
  0x9f   :  { %v186_v58 = vadd.f32 %v185_v54, %v184_v52  ;;  %v172_v59 = vadd.f32 %v171_v55, %v170_v53  ;;  %v169_v8 = vadd.f32 %v168_v60, %v167_v50  ;;  %v183_v17 = vadd.f32 %v182_v3, %v181_v57 }
  0xa1   :  { %v187_v62 = vrot.slane %v186_v58, 2  ;;  %v173_v63 = vrot.slane %v172_v59, 2  ;;  %v137_v0 = vpop.permute.xlu1 %136  ;;  %v130_v1 = vpop.permute.xlu0 %129  ;;  %v219_v23 = vmul.f32 0.125, %v169_v8  ;;  %v221_v27 = vmul.f32 0.125, %v183_v17 }
  0xa2   :  { %vm145_vm7 = vcmp.eq.s32.totalorder %v137_v0, %v808_v12  ;;  %vm144_vm8 = vcmp.eq.s32.totalorder %v130_v1, %v808_v12 }
  0xa3   :  { %v188_v4 = vadd.f32 %v187_v62, %v186_v58  ;;  %v174_v5 = vadd.f32 %v173_v63, %v172_v59  ;;  %v593_v6 = vsel %vm145_vm7, 1.0, %v769_v13  ;;  %v592_v7 = vsel %vm144_vm8, 1.0, %v769_v13 }
  0xa4   :  { %v212_v10 = vsel %vm162_vm1, %v593_v6, 0.0  ;;  %v205_v11 = vsel %vm162_vm1, %v592_v7, 0.0  ;;  %v197_v13 = vadd.f32 %v196_v2, %v195_v56  ;;  %v326_v53 = vpop.f32.mrf.mxu2  ;;  %vm545_vm7 = vcmask 1046528  }
  0xa5   :  { %v189_v12 = vrot.slane %v188_v4, 1  ;;  %v175_v14 = vrot.slane %v174_v5, 1  ;;  %v213_v15 = vrot.slane %v212_v10, 4  ;;  %v206_v16 = vrot.slane %v205_v11, 4 }
  0xa6   :  { %v223_v36 = vmul.f32 0.125, %v197_v13 }
  0xa7   :  { %v190_v18 = vadd.f32 %v189_v12, %v188_v4  ;;  %v176_v19 = vadd.f32 %v175_v14, %v174_v5  ;;  %v214_v20 = vadd.f32 %v213_v15, %v212_v10  ;;  %v207_v21 = vadd.f32 %v206_v16, %v205_v11 }
  0xa9   :  { %v220_v24 = vmul.f32 0.125, %v176_v19  ;;  %v215_v25 = vrot.slane %v214_v20, 2  ;;  %v208_v26 = vrot.slane %v207_v21, 2  ;;  %v222_v28 = vmul.f32 0.125, %v190_v18 }
  0xab   :  { %v240_v29 = vsel %vm239_vm9, %v220_v24, %v219_v23  ;;  %v216_v30 = vadd.f32 %v215_v25, %v214_v20  ;;  %v209_v31 = vadd.f32 %v208_v26, %v207_v21 }
  0xac   :  { %v242_v35 = vsel %vm241_vm10, %v221_v27, %v240_v29 }
  0xad   :  { %v217_v37 = vrot.slane %v216_v30, 1  ;;  %v210_v38 = vrot.slane %v209_v31, 1  ;;  %v244_v40 = vsel %vm243_vm11, %v222_v28, %v242_v35 }
  0xae   :  { %v246_v43 = vsel %vm245_vm12, %v223_v36, %v244_v40 }
  0xaf   :  { %v211_v41 = vadd.f32 %v210_v38, %v209_v31  ;;  %v218_v42 = vadd.f32 %v217_v37, %v216_v30  ;;  %v248_v48 = vsel %vm247_vm13, %v224_v44, %v246_v43 }
  0xb1   :  { %v225_v46 = vmul.f32 0.125, %v211_v41  ;;  %v226_v47 = vmul.f32 0.125, %v218_v42 }
  0xb3   :  { %v250_v49 = vsel %vm249_vm14, %v225_v46, %v248_v48 }
  0xb4   :  { %v252_v50 = vsel %vm251_vm15, %v226_v47, %v250_v49 }
  0xb5   :  { %594 = vmatmul.msk.f32.vlgmr.msra.gmra.mxu0 %vm162_vm1, %v252_v50 }
  0xb6   :  { %491 = vmatpush.msra.mxu0 %v822_v32 }
  0xb8   :  { %492 = vmatpush.msra.mxu0 %v824_v33 }
  0xba   :  { %493 = vmatpush.msra.mxu0 %v828_v39 }
  0xbc   :  { %494 = vmatpush.msra.mxu0 %v833_v45 }
 0x132   :  { %v272_v52 = vpop.f32.mrf.mxu0 }
 0x133   :  { %595 = vmatmul.msk.f32.vlgmr.msra.gmra.mxu1 %vm162_vm1, %v272_v52 }
 0x134   :  { %520 = vmatpush.msra.mxu1 %v822_v32 }
 0x136   :  { %521 = vmatpush.msra.mxu1 %v824_v33 }
 0x138   :  { %522 = vmatpush.msra.mxu1 %v828_v39 }
 0x13a   :  { %523 = vmatpush.msra.mxu1 %v833_v45 }
 0x1b0   :  { %v299_v54 = vpop.f32.mrf.mxu1 }
 0x1b1   :  { %v329_v55 = vadd.f32 %v326_v53, %v299_v54 }
 0x1b3   :  { %615 = vtanh.f32 %v329_v55 }
 0x1b9   :  { %v616_v56 = vpop.eup %615 }
 0x1ba   :  { %596 = vmatmul.msk.f32.vlgmr.msra.gmra.mxu3 %vm162_vm1, %v616_v56 }
 0x23d   :  { %v351_v57 = vpop.f32.mrf.mxu3 }
 0x23e   :  { %v355_v58 = vrot.slane %v351_v57, 7 }
 0x240   :  { %v357_v59 = vadd.f32 %v355_v58, %v299_v54 }
 0x242   :  { %617 = vtanh.f32 %v357_v59 }
 0x248   :  { %v618_v60 = vpop.eup %617 }
 0x249   :  { %v360_v61 = vrot.slane %v618_v60, 1  ;;  %v534_v62 = vsel %vm533_vm0, %v616_v56, %v618_v60 }
 0x24b   :  { %597 = vmatmul.msk.f32.vlgmr.msrb.gmra.mxu0 %vm162_vm1, %v360_v61 }
 0x2c8   :  { %v380_v32 = vpop.f32.mrf.mxu0 }
 0x2c9   :  { %v384_v33 = vrot.slane %v380_v32, 6 }
 0x2cb   :  { %v386_v39 = vadd.f32 %v384_v33, %v299_v54 }
 0x2cd   :  { %619 = vtanh.f32 %v386_v39 }
 0x2d3   :  { %v620_v45 = vpop.eup %619 }
 0x2d4   :  { %v536_v63 = vsel %vm535_vm2, %v534_v62, %v620_v45  ;;  %v389_v0 = vrot.slane %v620_v45, 2 }
 0x2d6   :  { %598 = vmatmul.msk.f32.vlgmr.msrb.gmra.mxu1 %vm162_vm1, %v389_v0 }
 0x353   :  { %v409_v1 = vpop.f32.mrf.mxu1 }
 0x354   :  { %v413_v2 = vrot.slane %v409_v1, 5 }
 0x356   :  { %v415_v3 = vadd.f32 %v413_v2, %v299_v54 }
 0x358   :  { %621 = vtanh.f32 %v415_v3 }
 0x35e   :  { %v622_v4 = vpop.eup %621 }
 0x35f   :  { %v538_v5 = vsel %vm537_vm3, %v536_v63, %v622_v4  ;;  %v418_v6 = vrot.slane %v622_v4, 3 }
 0x361   :  { %599 = vmatmul.msk.f32.vlgmr.msrb.gmra.mxu2 %vm162_vm1, %v418_v6 }
 0x3e4   :  { %v438_v7 = vpop.f32.mrf.mxu2 }
 0x3e5   :  { %v442_v8 = vrot.slane %v438_v7, 4 }
 0x3e7   :  { %v444_v9 = vadd.f32 %v442_v8, %v299_v54 }
 0x3e9   :  { %623 = vtanh.f32 %v444_v9 }
 0x3ef   :  { %v624_v10 = vpop.eup %623 }
 0x3f0   :  { %v540_v11 = vsel %vm539_vm4, %v538_v5, %v624_v10  ;;  %v447_v12 = vrot.slane %v624_v10, 4 }
 0x3f2   :  { %600 = vmatmul.msk.f32.vlgmr.msrb.gmra.mxu3 %vm162_vm1, %v447_v12 }
 0x475   :  { %v467_v14 = vpop.f32.mrf.mxu3 }
 0x476   :  { %v471_v15 = vrot.slane %v467_v14, 3 }
 0x478   :  { %v473_v16 = vadd.f32 %v471_v15, %v299_v54 }
 0x47a   :  { %625 = vtanh.f32 %v473_v16 }
 0x480   :  { %v626_v17 = vpop.eup %625 }
 0x481   :  { %v476_v18 = vrot.slane %v626_v17, 5  ;;  %v542_v19 = vsel %vm541_vm5, %v540_v11, %v626_v17 }
 0x483   :  { %601 = vmatmul.msk.f32.vlgmr.msra.gmra.mxu0 %vm162_vm1, %v476_v18 }
 0x500   :  { %v496_v20 = vpop.f32.mrf.mxu0 }
 0x501   :  { %v500_v21 = vrot.slane %v496_v20, 2 }
 0x503   :  { %v502_v13 = vadd.f32 %v500_v21, %v299_v54 }
 0x505   :  { %627 = vtanh.f32 %v502_v13 }
 0x50b   :  { %v628_v22 = vpop.eup %627 }
 0x50c   :  { %v505_v23 = vrot.slane %v628_v22, 6  ;;  %v544_v24 = vsel %vm543_vm6, %v542_v19, %v628_v22 }
 0x50e   :  { %602 = vmatmul.msk.f32.vlgmr.msra.gmra.mxu1 %vm162_vm1, %v505_v23 }
 0x58b   :  { %v525_v25 = vpop.f32.mrf.mxu1 }
 0x58c   :  { %v529_v26 = vrot.slane %v525_v25, 1 }
 0x58e   :  { %v531_v27 = vadd.f32 %v529_v26, %v299_v54 }
 0x590   :  { %629 = vtanh.f32 %v531_v27 }
 0x596   :  { %v630_v28 = vpop.eup %629 }
 0x597   :  { %v546_v29 = vsel %vm545_vm7, %v544_v24, %v630_v28 }
 0x598   :  { %v603_v30 = vmul.f32 -1.442695, %v546_v29 }
 0x59a   :  { %631 = vpow2.f32 %v603_v30 }
 0x5a0   :  { %v632_v31 = vpop.eup %631 }
 0x5a1   :  { %v550_v34 = vadd.f32 1.0, %v632_v31 }
 0x5a3   :  { %633 = vrcp.f32 %v550_v34  ;;  %v562_v38 = vand.u32 2147483648, %v550_v34  ;;  %v560_v41 = vand.u32 2147483647, %v550_v34  ;;  %vm556_vm9 = vweird.f32 %v550_v34 }
 0x5a5   :  { %v563_v43 = vor.u32 1.1754944e-38, %v562_v38  ;;  %vm561_vm11 = vcmp.eq.f32.partialorder %v560_v41, 8.507059e+37 }
 0x5a9   :  { %v634_v35 = vpop.eup %633 }
 0x5aa   :  { %v552_v36 = vmul.f32 %v634_v35, %v550_v34  ;;  %vm557_vm8 = vweird.f32 %v634_v35 }
 0x5ab   :  { %vm558_vm10 = vmor %vm556_vm9, %vm557_vm8 }
 0x5ac   :  { %v553_v37 = vsub.f32 1.0, %v552_v36 }
 0x5ae   :  { %v554_v40 = vmul.f32 %v634_v35, %v553_v37 }
 0x5b0   :  { %v555_v42 = vadd.f32 %v634_v35, %v554_v40 }
 0x5b2   :  { %v559_v44 = vsel %vm558_vm10, %v634_v35, %v555_v42 }
 0x5b3   :  { %v564_v46 = vsel %vm561_vm11, %v563_v43, %v559_v44 }
 0x5b4   :  { %566 = vst.msk [vmem:[#allocation10] sm:$0xff] %vm162_vm1, %v564_v46 }
 0x5b5   :  { %577 = dma.vmem_to_hbm [thread:$0]  %s573_s3, 128, %s575_s11, [#allocation4]  }
 0x5b6   :  { %761 = dma.done.wait [#allocation4], 128  }
 0x5b7   :  { %762 = vsyncadd [#allocation4], 4294967168 }
 0x5b8   :  { %582 = vsyncpa [#allocation3], 1 }
 0x5b9   :  { %583 = vsyncpa [#allocation6], 1 }
 0x5ba   :  { %584 = vsyncpa [#allocation9], 1 }
 0x5bb   :  { %585 = vsyncpa [#allocation4], 1 }

</bundles_post_ra>
